<compile_context>
chip_gen: v7x
topology: tpu7x:2x2x1
jax: 0.10.0
libtpu: 0.0.40
codegen_flags: <defaults>
</compile_context>

<pallas_src>
import functools
import math

import jax
import jax.numpy as jnp
from jax.experimental import pallas as pl
from jax.experimental.pallas import tpu as pltpu


def _round_up(x, m):
    return (x + m - 1) // m * m


def _gelu(x, approximate):
    if approximate:
        # tanh form: lowers to the EUP (separate bundle slot) -> nearly free
        # next to the MXU work on v6e/v7x. Deviates ~1e-3 from exact erf gelu.
        return jax.nn.gelu(x, approximate=True)
    # BERT's exact gelu: x * 0.5 * (1 + erf(x / sqrt(2))) -- VALU polynomial.
    return x * 0.5 * (1.0 + jax.lax.erf(x * (1.0 / math.sqrt(2.0))))


@functools.lru_cache(maxsize=1)
def _vmem_budget_bytes():
    # Generation-aware VMEM cap: v5e/v6e have 128 MiB per core, v7x only 64 MiB.
    try:
        cap = int(pltpu.get_tpu_info().vmem_capacity_bytes)
    except Exception:
        cap = 64 * 1024 * 1024          # conservative default (v7x per-TC VMEM)
    return int(cap * 0.85)              # leave ~15% headroom for compiler scratch


def _pick_chunk(Ip, target=512):
    """Largest multiple of 128 that divides Ip and is <= target."""
    c = min(target, Ip)
    c -= c % 128
    while Ip % c:
        c -= 128
    return max(c, 128)


def _vmem_need_bytes(tm_eff, Hp, Ip, chunk, out_itemsize):
    weight_b = (Hp * Ip + Ip * Hp) * 2                            # bf16, single-buffered
    bias_b = (Ip + Hp) * 4
    io_b = 2 * tm_eff * Hp * 2 + 2 * tm_eff * Hp * out_itemsize   # x / out, double-buffered
    tmp_b = 3 * tm_eff * chunk * 4 + tm_eff * Hp * 4              # per-chunk f32 temps + accumulator
    return int(1.25 * (weight_b + bias_b + io_b + tmp_b))


def tp_bert_mlp_kernel(x_ref, w1_ref, b1_ref, w2_ref, b2_ref, o_ref, *,
                       n_chunks, chunk, approximate_gelu):
    # x_ref:  (tm, Hp)   bf16 activation tile
    # w1_ref: (Hp, Ip)   bf16 dense1 weight ([in, out]), VMEM-resident
    # b1_ref: (1, Ip)    f32  dense1 bias
    # w2_ref: (Ip, Hp)   bf16 dense2 weight ([in, out]), VMEM-resident
    # b2_ref: (1, Hp)    f32  dense2 bias
    # o_ref:  (tm, Hp)   output tile
    x = x_ref[...]                                    # bf16 MXU operand
    tm, Hp = o_ref.shape
    acc = jnp.zeros((tm, Hp), jnp.float32)

    # Fully-unrolled static loop over Ip chunks: keeps the f32 intermediate at
    # (tm, chunk) and lets the scheduler overlap the gelu/cast (VPU/EUP) of one
    # chunk with the MXU work of the next.
    for c in range(n_chunks):
        col = c * chunk
        h = jnp.dot(x, w1_ref[:, col:col + chunk],
                    preferred_element_type=jnp.float32)           # (tm, chunk) f32
        h = h + b1_ref[:, col:col + chunk]
        g = _gelu(h, approximate_gelu)
        # dropout == identity (eval mode)
        acc = acc + jnp.dot(g.astype(jnp.bfloat16), w2_ref[col:col + chunk, :],
                            preferred_element_type=jnp.float32)

    y = acc + b2_ref[...]
    # reduce_from_tensor_model_parallel_region: identity for tp_world_size == 1
    o_ref[...] = y.astype(o_ref.dtype)


def prepare_tp_bert_mlp_params(w1, b1, w2, b2):
    """Pad weights/biases to lane multiples of 128 and cast weights to bf16.

    Call once and reuse across forward calls so per-call HBM traffic is only
    the activations (not a re-pad/re-cast of the weights every step).
    w1: [H, I], b1: [I], w2: [I, H], b2: [H] (weights stored [in, out]).
    """
    H, I = w1.shape
    Hp, Ip = _round_up(H, 128), _round_up(I, 128)
    w1p = jnp.pad(w1, ((0, Hp - H), (0, Ip - I))).astype(jnp.bfloat16)
    w2p = jnp.pad(w2, ((0, Ip - I), (0, Hp - H))).astype(jnp.bfloat16)
    b1p = jnp.pad(b1, (0, Ip - I)).astype(jnp.float32).reshape(1, Ip)
    b2p = jnp.pad(b2, (0, Hp - H)).astype(jnp.float32).reshape(1, Hp)
    return w1p, b1p, w2p, b2p


@functools.partial(jax.jit, static_argnames=("tm", "approximate_gelu", "out_dtype"))
def tp_bert_mlp(x, w1p, b1p, w2p, b2p, *, tm=256, approximate_gelu=True,
                out_dtype=None):
    """x: [B, S, H]; w1p/b1p/w2p/b2p from prepare_tp_bert_mlp_params."""
    B, S, H = x.shape
    Hp, Ip = w1p.shape
    M = B * S
    out_dtype = x.dtype if out_dtype is None else jnp.dtype(out_dtype)
    out_itemsize = jnp.dtype(out_dtype).itemsize

    # Row tile: multiple of 16 (bf16 sublane packing); ensure >= 2 grid steps
    # whenever M allows so both v7x TensorCores get row tiles to work on.
    tm_eff = min(tm, max(16, _round_up(-(-M // 2), 16)))

    chunk = _pick_chunk(Ip)
    n_chunks = Ip // chunk

    budget = _vmem_budget_bytes()
    need = _vmem_need_bytes(tm_eff, Hp, Ip, chunk, out_itemsize)
    if need > budget and tm_eff > 128:
        tm_eff = 128                      # tight-VMEM fallback (v5e/v7x)
        need = _vmem_need_bytes(tm_eff, Hp, Ip, chunk, out_itemsize)
    vmem_limit = int(min(max(need, 32 * 1024 * 1024), budget))

    # Zero padding is exact: gelu(0) == 0 and zero weight rows/cols contribute
    # nothing; pad rows are sliced off after the call.
    Mp = _round_up(M, tm_eff)
    x2d = jnp.pad(x.reshape(M, H), ((0, Mp - M), (0, Hp - H))).astype(jnp.bfloat16)

    cost = pl.CostEstimate(
        flops=4 * Mp * Hp * Ip,            # two matmuls, 2*M*K*N each
        transcendentals=Mp * Ip,           # one tanh/erf per intermediate element
        bytes_accessed=(x2d.size * 2 + w1p.size * 2 + w2p.size * 2
                        + b1p.size * 4 + b2p.size * 4 + Mp * Hp * out_itemsize),
    )

    kernel = functools.partial(tp_bert_mlp_kernel, n_chunks=n_chunks,
                               chunk=chunk, approximate_gelu=approximate_gelu)

    # Constant index_map -> single buffer (no wasted second pipeline buffer).
    resident = dict(pipeline_mode=pl.Buffered(1))

    out = pl.pallas_call(
        kernel,
        out_shape=jax.ShapeDtypeStruct((Mp, Hp), out_dtype),
        grid_spec=pltpu.PrefetchScalarGridSpec(
            num_scalar_prefetch=0,
            grid=(Mp // tm_eff,),
            in_specs=[
                pl.BlockSpec((tm_eff, Hp), lambda i: (i, 0)),             # activation rows
                pl.BlockSpec((Hp, Ip), lambda i: (0, 0), **resident),     # W1 (resident)
                pl.BlockSpec((1, Ip), lambda i: (0, 0), **resident),      # b1
                pl.BlockSpec((Ip, Hp), lambda i: (0, 0), **resident),     # W2 (resident)
                pl.BlockSpec((1, Hp), lambda i: (0, 0), **resident),      # b2
            ],
            out_specs=pl.BlockSpec((tm_eff, Hp), lambda i: (i, 0)),
        ),
        compiler_params=pltpu.CompilerParams(
            dimension_semantics=("parallel",),
            vmem_limit_bytes=vmem_limit,
        ),
        cost_estimate=cost,
    )(x2d, w1p, b1p, w2p, b2p)

    return out[:M, :H].reshape(B, S, H)


def _init_linear(key, in_features, out_features):
    # Matches torch.nn.Linear default init: U(-1/sqrt(in), 1/sqrt(in)).
    kw, kb = jax.random.split(key)
    bound = 1.0 / math.sqrt(in_features)
    # Stored transposed: [in_features, out_features]
    w_t = jax.random.uniform(kw, (in_features, out_features), jnp.float32,
                             minval=-bound, maxval=bound)
    b = jax.random.uniform(kb, (out_features,), jnp.float32,
                           minval=-bound, maxval=bound)
    return w_t, b


if __name__ == "__main__":
    # Small config: batch=2, seq=8, hidden_size=32, tp_intermediate_size=64
    batch, seq, hidden, tp_intermediate = 2, 8, 32, 64

    key = jax.random.PRNGKey(0)
    kx, k1, k2 = jax.random.split(key, 3)

    x = jax.random.normal(kx, (batch, seq, hidden), jnp.float32)
    w1, b1 = _init_linear(k1, hidden, tp_intermediate)        # dense1
    w2, b2 = _init_linear(k2, tp_intermediate, hidden)        # dense2

    params = prepare_tp_bert_mlp_params(w1, b1, w2, b2)       # pad/cast once
    y = tp_bert_mlp(x, *params)
    y = jax.block_until_ready(y)

    # Pure-JAX f32 reference with exact erf gelu. The kernel uses bf16 MXU
    # operands / f32 accumulation and (by default) tanh-approximate gelu, so
    # compare at a bf16-level tolerance.
    h_ref = _gelu(x.reshape(-1, hidden) @ w1 + b1, approximate=False)
    y_ref = (h_ref @ w2 + b2).reshape(batch, seq, hidden)
    max_err = float(jnp.max(jnp.abs(y - y_ref)))
    assert jnp.allclose(y, y_ref, atol=3e-2, rtol=3e-2), (
        f"mismatch vs reference (max abs err {max_err})")

    print("KERNEL_OK")
</pallas_src>

<mosaic_0001>
module attributes {stable_mosaic.version = 11 : i64} {
  func.func @tp_bert_mlp_kernel(%arg0: i32, %arg1: memref<16x128xbf16, #tpu.memory_space<vmem>>, %arg2: memref<128x128xbf16, #tpu.memory_space<vmem>>, %arg3: memref<1x128xf32, #tpu.memory_space<vmem>>, %arg4: memref<128x128xbf16, #tpu.memory_space<vmem>>, %arg5: memref<1x128xf32, #tpu.memory_space<vmem>>, %arg6: memref<16x128xf32, #tpu.memory_space<vmem>>) attributes {dimension_semantics = [#tpu.dimension_semantics<parallel>], iteration_bounds = array<i64: 1>, scalar_prefetch = 0 : i64, scratch_operands = 0 : i64, tpu.core_type = #tpu.core_type<tc>, window_params = [{transform_indices = @transform_0, window_bounds = array<i64: 16, 128>}, {pipeline_mode = #tpu.pipeline_mode<synchronous>, transform_indices = @transform_1, window_bounds = array<i64: 128, 128>}, {pipeline_mode = #tpu.pipeline_mode<synchronous>, transform_indices = @transform_2, window_bounds = array<i64: 1, 128>}, {pipeline_mode = #tpu.pipeline_mode<synchronous>, transform_indices = @transform_3, window_bounds = array<i64: 128, 128>}, {pipeline_mode = #tpu.pipeline_mode<synchronous>, transform_indices = @transform_4, window_bounds = array<i64: 1, 128>}, {transform_indices = @transform_5, window_bounds = array<i64: 16, 128>}]} {
    %c0 = arith.constant 0 : index
    %c0_0 = arith.constant 0 : index
    %0 = vector.load %arg1[%c0, %c0_0] : memref<16x128xbf16, #tpu.memory_space<vmem>>, vector<16x128xbf16>
    %cst = arith.constant 0.000000e+00 : f32
    %1 = vector.broadcast %cst : f32 to vector<16x128xf32>
    %c0_1 = arith.constant 0 : index
    %c0_2 = arith.constant 0 : index
    %2 = vector.load %arg2[%c0_1, %c0_2] : memref<128x128xbf16, #tpu.memory_space<vmem>>, vector<128x128xbf16>
    %cst_3 = arith.constant dense<0.000000e+00> : vector<16x128xf32>
    %3 = tpu.matmul %0, %2, %cst_3 {dimension_numbers = #tpu.dot_dimension_numbers<[1], [0], [0], [1], [0, 0, 1, 1], [], []>} : vector<16x128xbf16>, vector<128x128xbf16>, vector<16x128xf32> -> vector<16x128xf32>
    %c0_4 = arith.constant 0 : index
    %c0_5 = arith.constant 0 : index
    %4 = vector.load %arg3[%c0_4, %c0_5] : memref<1x128xf32, #tpu.memory_space<vmem>>, vector<1x128xf32>
    %5 = vector.broadcast %4 : vector<1x128xf32> to vector<16x128xf32>
    %6 = arith.addf %3, %5 : vector<16x128xf32>
    %7 = arith.mulf %6, %6 : vector<16x128xf32>
    %8 = arith.mulf %6, %7 : vector<16x128xf32>
    %cst_6 = arith.constant 4.471500e-02 : f32
    %9 = vector.broadcast %cst_6 : f32 to vector<16x128xf32>
    %10 = arith.mulf %9, %8 : vector<16x128xf32>
    %11 = arith.addf %6, %10 : vector<16x128xf32>
    %cst_7 = arith.constant 0.797884583 : f32
    %12 = vector.broadcast %cst_7 : f32 to vector<16x128xf32>
    %13 = arith.mulf %12, %11 : vector<16x128xf32>
    %14 = math.tanh %13 : vector<16x128xf32>
    %cst_8 = arith.constant 1.000000e+00 : f32
    %15 = vector.broadcast %cst_8 : f32 to vector<16x128xf32>
    %16 = arith.addf %15, %14 : vector<16x128xf32>
    %cst_9 = arith.constant 5.000000e-01 : f32
    %17 = vector.broadcast %cst_9 : f32 to vector<16x128xf32>
    %18 = arith.mulf %17, %16 : vector<16x128xf32>
    %19 = arith.mulf %6, %18 : vector<16x128xf32>
    %20 = arith.truncf %19 : vector<16x128xf32> to vector<16x128xbf16>
    %c0_10 = arith.constant 0 : index
    %c0_11 = arith.constant 0 : index
    %21 = vector.load %arg4[%c0_10, %c0_11] : memref<128x128xbf16, #tpu.memory_space<vmem>>, vector<128x128xbf16>
    %cst_12 = arith.constant dense<0.000000e+00> : vector<16x128xf32>
    %22 = tpu.matmul %20, %21, %cst_12 {dimension_numbers = #tpu.dot_dimension_numbers<[1], [0], [0], [1], [0, 0, 1, 1], [], []>} : vector<16x128xbf16>, vector<128x128xbf16>, vector<16x128xf32> -> vector<16x128xf32>
    %23 = arith.addf %1, %22 : vector<16x128xf32>
    %c0_13 = arith.constant 0 : index
    %c0_14 = arith.constant 0 : index
    %24 = vector.load %arg5[%c0_13, %c0_14] : memref<1x128xf32, #tpu.memory_space<vmem>>, vector<1x128xf32>
    %25 = vector.broadcast %24 : vector<1x128xf32> to vector<16x128xf32>
    %26 = arith.addf %23, %25 : vector<16x128xf32>
    %c0_15 = arith.constant 0 : index
    %c0_16 = arith.constant 0 : index
    %27 = vector.load %arg6[%c0_15, %c0_16] : memref<16x128xf32, #tpu.memory_space<vmem>>, vector<16x128xf32>
    tpu.vector_store %arg6[%c0_15, %c0_16], %26 {strides = array<i32>} : memref<16x128xf32, #tpu.memory_space<vmem>>, vector<16x128xf32>,
    return
  }
  func.func @transform_0(%arg0: i32) -> (i32, i32) {
    %c0_i32 = arith.constant 0 : i32
    %c0_i32_0 = arith.constant 0 : i32
    return %arg0, %c0_i32 : i32, i32
  }
  func.func @transform_1(%arg0: i32) -> (i32, i32) {
    %c0_i32 = arith.constant 0 : i32
    %c0_i32_0 = arith.constant 0 : i32
    %c0_i32_1 = arith.constant 0 : i32
    return %c0_i32, %c0_i32_0 : i32, i32
  }
  func.func @transform_2(%arg0: i32) -> (i32, i32) {
    %c0_i32 = arith.constant 0 : i32
    %c0_i32_0 = arith.constant 0 : i32
    %c0_i32_1 = arith.constant 0 : i32
    return %c0_i32, %c0_i32_0 : i32, i32
  }
  func.func @transform_3(%arg0: i32) -> (i32, i32) {
    %c0_i32 = arith.constant 0 : i32
    %c0_i32_0 = arith.constant 0 : i32
    %c0_i32_1 = arith.constant 0 : i32
    return %c0_i32, %c0_i32_0 : i32, i32
  }
  func.func @transform_4(%arg0: i32) -> (i32, i32) {
    %c0_i32 = arith.constant 0 : i32
    %c0_i32_0 = arith.constant 0 : i32
    %c0_i32_1 = arith.constant 0 : i32
    return %c0_i32, %c0_i32_0 : i32, i32
  }
  func.func @transform_5(%arg0: i32) -> (i32, i32) {
    %c0_i32 = arith.constant 0 : i32
    %c0_i32_0 = arith.constant 0 : i32
    return %arg0, %c0_i32 : i32, i32
  }
}

</mosaic_0001>

<bundles_post_ra>
// kernel: tp_bert_mlp.1
= control target key start
LH: loop header
LB: loop body
LE: loop exit
PB: predicated region body
PF: predicated region fallthrough
CT: control target
= control target key end

     0   :  { %10 = vsyncpa [#allocation3], 0  ;;  %s535_s0 = inlined_call_operand.vmem [shape: bf16[16,128], index: 0, kind: input, shape index: {}]   ;;  %s536_s1 = inlined_call_operand.hbm [shape: bf16[128,128], index: 1, kind: input, shape index: {}]   ;;  %s537_s2 = inlined_call_operand.vmem [shape: f32[1,128], index: 2, kind: input, shape index: {}]   ;;  %s538_s3 = inlined_call_operand.hbm [shape: bf16[128,128], index: 3, kind: input, shape index: {}]   ;;  %s539_s4 = inlined_call_operand.vmem [shape: f32[1,128], index: 4, kind: input, shape index: {}]   ;;  %s540_s5 = inlined_call_operand.vmem [shape: f32[16,128], index: 5, kind: output, shape index: {}]  }
   0x1   :  { %11 = vsyncpa [#allocation5], 0  ;;  %s460_s18 = smov [#allocation2]   ;;  %s412_s22 = scalar_lea.hbm %s536_s1, 1024 }
   0x2   :  { %s19_s19 = sshll.u32 %s460_s18, 4  ;;  %p413_p0 = scmp.ne.s32.totalorder %s536_s1, %s412_s22  ;;  %s20_s19 = int_to_ptr.vmem [resolvable:$true] %s19_s19 }
   0x3   :  { %p416_p1 = scmp.lt.u32.totalorder %s412_s22, %s536_s1 }
   0x5   :  { %p418_p2 = pnand %p416_p1, %p413_p0 }
   0x7   :  { %421 = shalt.err (!%p418_p2)
}
   0x8   :  { %s422_s27 = scalar_lea.vmem %s20_s19, 1024  ;;  %p427_p4 = scmp.lt.s32.totalorder %s20_s19, %s20_s19 }
   0x9   :  { %p423_p3 = scmp.ne.s32.totalorder %s20_s19, %s422_s27  ;;  %p428_p5 = scmp.lt.s32.totalorder %s422_s27, %s422_s27 }
   0xb   :  { %p429_p6 = por %p428_p5, %p427_p4 }
   0xd   :  { %p430_p7 = pnand %p429_p6, %p423_p3 }
   0xf   :  { %433 = shalt.err (!%p430_p7)
}
  0x10   :  { %s461_s28 = smov 64   ;;  %s462_s29 = smov 4  }
  0x11   :  { %25 = dma.hbm_to_vmem [thread:$0]  %s536_s1, 1024, %s20_s19, [#allocation3], %s461_s28, %s461_s28, %s462_s29  }
  0x12   :  { %s463_s7 = smov [#allocation4]   ;;  %s434_s11 = scalar_lea.hbm %s538_s3, 1024 }
  0x13   :  { %s33_s8 = sshll.u32 %s463_s7, 4  ;;  %p435_p8 = scmp.ne.s32.totalorder %s538_s3, %s434_s11  ;;  %s34_s8 = int_to_ptr.vmem [resolvable:$true] %s33_s8 }
  0x14   :  { %p438_p9 = scmp.lt.u32.totalorder %s434_s11, %s538_s3 }
  0x16   :  { %p440_p10 = pnand %p438_p9, %p435_p8 }
  0x18   :  { %443 = shalt.err (!%p440_p10)
}
  0x19   :  { %s444_s16 = scalar_lea.vmem %s34_s8, 1024  ;;  %p449_p12 = scmp.lt.s32.totalorder %s34_s8, %s34_s8 }
  0x1a   :  { %p445_p11 = scmp.ne.s32.totalorder %s34_s8, %s444_s16  ;;  %p450_p13 = scmp.lt.s32.totalorder %s444_s16, %s444_s16 }
  0x1c   :  { %p451_p0 = por %p450_p13, %p449_p12 }
  0x1e   :  { %p452_p1 = pnand %p451_p0, %p445_p11 }
  0x20   :  { %455 = shalt.err (!%p452_p1)
}
  0x21   :  { %39 = dma.hbm_to_vmem [thread:$0]  %s538_s3, 1024, %s34_s8, [#allocation5], %s461_s28, %s461_s28, %s462_s29  }
  0x22   :  { %456 = dma.done.wait [#allocation3], 1024  }
  0x23   :  { %457 = vsyncadd [#allocation3], 4294966272 }
  0x24   :  { %458 = dma.done.wait [#allocation5], 1024  }
  0x25   :  { %459 = vsyncadd [#allocation5], 4294966272  ;;  %v464_v0 = vmov 0.0   ;;  %vm465_vm0 = vmmov 0   ;;  %v391_v1 = vld [vmem:[#allocation2] sm:$0xff]   ;;  %v392_v2 = vld [vmem:[#allocation2 + $0x8] sm:$0xff]  }
  0x26   :  { %345 = vmatprep.subr.bf16.mxu0 %v464_v0  ;;  %361 = vmatprep.mubr.msk.bf16.mxu0 %vm465_vm0, %v464_v0  ;;  %v393_v3 = vld [vmem:[#allocation2 + $0x10] sm:$0xff]   ;;  %v394_v4 = vld [vmem:[#allocation2 + $0x18] sm:$0xff]   ;;  %v395_v5 = vld [vmem:[#allocation2 + $0x20] sm:$0xff]  }
  0x27   :  { %365 = vmatprep.subr.bf16.mxu1 %v464_v0  ;;  %381 = vmatprep.mubr.msk.bf16.mxu1 %vm465_vm0, %v464_v0  ;;  %v396_v6 = vld [vmem:[#allocation2 + $0x28] sm:$0xff]   ;;  %v397_v7 = vld [vmem:[#allocation2 + $0x30] sm:$0xff]   ;;  %v398_v8 = vld [vmem:[#allocation2 + $0x38] sm:$0xff]  }
  0x28   :  { %346 = vmatpush3.bf16.msra.mxu0 %v391_v1  ;;  %v399_v9 = vld [vmem:[%s535_s0] sm:$0xff]   ;;  %v401_v11 = vld [vmem:[#allocation4 + $0x8] sm:$0xff]   ;;  %v402_v12 = vld [vmem:[#allocation4 + $0x10] sm:$0xff]  }
  0x29   :  { %347 = vmatprep.subr.bf16.mxu0 %v464_v0  ;;  %v400_v10 = vld [vmem:[#allocation4] sm:$0xff]   ;;  %v403_v13 = vld [vmem:[#allocation4 + $0x18] sm:$0xff]   ;;  %v405_v15 = vld [vmem:[#allocation4 + $0x28] sm:$0xff]  }
  0x2a   :  { %366 = vmatpush3.bf16.msra.mxu1 %v400_v10  ;;  %v404_v14 = vld [vmem:[#allocation4 + $0x20] sm:$0xff]   ;;  %v406_v16 = vld [vmem:[#allocation4 + $0x30] sm:$0xff]   ;;  %v407_v17 = vld [vmem:[#allocation4 + $0x38] sm:$0xff]  }
  0x2b   :  { %367 = vmatprep.subr.bf16.mxu1 %v464_v0  ;;  %v308_v18 = vld [vmem:[%s537_s2] ss:$0 sm:$0xff] }
  0x2c   :  { %348 = vmatpush3.bf16.msra.mxu0 %v392_v2  ;;  %v318_v44 = vld [vmem:[%s539_s4] ss:$0 sm:$0xff] }
  0x2d   :  { %349 = vmatprep.subr.bf16.mxu0 %v464_v0 }
  0x2e   :  { %368 = vmatpush3.bf16.msra.mxu1 %v401_v11 }
  0x2f   :  { %369 = vmatprep.subr.bf16.mxu1 %v464_v0 }
  0x30   :  { %350 = vmatpush3.bf16.msra.mxu0 %v393_v3 }
  0x31   :  { %351 = vmatprep.subr.bf16.mxu0 %v464_v0 }
  0x32   :  { %370 = vmatpush3.bf16.msra.mxu1 %v402_v12 }
  0x33   :  { %371 = vmatprep.subr.bf16.mxu1 %v464_v0 }
  0x34   :  { %352 = vmatpush3.bf16.msra.mxu0 %v394_v4 }
  0x35   :  { %353 = vmatprep.subr.bf16.mxu0 %v464_v0 }
  0x36   :  { %372 = vmatpush3.bf16.msra.mxu1 %v403_v13 }
  0x37   :  { %373 = vmatprep.subr.bf16.mxu1 %v464_v0 }
  0x38   :  { %354 = vmatpush3.bf16.msra.mxu0 %v395_v5 }
  0x39   :  { %355 = vmatprep.subr.bf16.mxu0 %v464_v0 }
  0x3a   :  { %374 = vmatpush3.bf16.msra.mxu1 %v404_v14 }
  0x3b   :  { %375 = vmatprep.subr.bf16.mxu1 %v464_v0 }
  0x3c   :  { %356 = vmatpush3.bf16.msra.mxu0 %v396_v6 }
  0x3d   :  { %357 = vmatprep.subr.bf16.mxu0 %v464_v0 }
  0x3e   :  { %376 = vmatpush3.bf16.msra.mxu1 %v405_v15 }
  0x3f   :  { %377 = vmatprep.subr.bf16.mxu1 %v464_v0 }
  0x40   :  { %358 = vmatpush3.bf16.msra.mxu0 %v397_v7 }
  0x41   :  { %359 = vmatprep.subr.bf16.mxu0 %v464_v0 }
  0x42   :  { %378 = vmatpush3.bf16.msra.mxu1 %v406_v16 }
  0x43   :  { %379 = vmatprep.subr.bf16.mxu1 %v464_v0 }
  0x44   :  { %360 = vmatpush3.bf16.msra.mxu0 %v398_v8 }
  0x46   :  { %380 = vmatpush3.bf16.msra.mxu1 %v407_v17 }
  0x47   :  { %362 = vmatmul.mubr.bf16.vlgmr.msra.gmra.mrb[0].mxu0 %v399_v9 }
 0x11a   :  { %v162_v19 = vpop.f32.mrb[0].mxu0 }
 0x11b   :  { %v163_v20 = vadd.f32 %v308_v18, %v162_v19  ;;  %v363_v21 = vpop.f32.mrb[1].mxu0 }
 0x11c   :  { %v165_v22 = vpop.f32.mrb[2].mxu0 }
 0x11d   :  { %v169_v23 = vmul.f32 %v163_v20, %v163_v20  ;;  %v166_v24 = vadd.f32 %v308_v18, %v165_v22  ;;  %v364_v25 = vpop.f32.mrb[3].mxu0 }
 0x11f   :  { %v171_v26 = vmul.f32 %v169_v23, %v163_v20  ;;  %v170_v27 = vmul.f32 %v166_v24, %v166_v24 }
 0x121   :  { %v173_v28 = vmul.f32 0.044715, %v171_v26  ;;  %v172_v29 = vmul.f32 %v170_v27, %v166_v24 }
 0x123   :  { %v175_v30 = vadd.f32 %v173_v28, %v163_v20  ;;  %v174_v31 = vmul.f32 0.044715, %v172_v29 }
 0x125   :  { %v177_v32 = vmul.f32 0.7978846, %v175_v30  ;;  %v176_v33 = vadd.f32 %v174_v31, %v166_v24 }
 0x127   :  { %408 = vtanh.f32 %v177_v32  ;;  %v178_v34 = vmul.f32 0.7978846, %v176_v33 }
 0x129   :  { %410 = vtanh.f32 %v178_v34 }
 0x131   :  { %v409_v35 = vpop.eup %408 }
 0x132   :  { %v181_v36 = vadd.f32 1.0, %v409_v35 }
 0x133   :  { %v411_v37 = vpop.eup %410 }
 0x134   :  { %v182_v38 = vadd.f32 1.0, %v411_v37  ;;  %v183_v39 = vmul.f32 0.5, %v181_v36 }
 0x136   :  { %v184_v40 = vmul.f32 0.5, %v182_v38  ;;  %v185_v41 = vmul.f32 %v183_v39, %v163_v20 }
 0x138   :  { %v186_v42 = vmul.f32 %v184_v40, %v166_v24 }
 0x13a   :  { %v187_v43 = vpack.c.bf16 %v186_v42, %v185_v41 }
 0x13c   :  { %382 = vmatmul.mubr.bf16.vlgmr.msra.gmra.mrb[0].mxu1 %v187_v43 }
 0x20f   :  { %v293_v45 = vpop.f32.mrb[0].mxu1 }
 0x210   :  { %v294_v46 = vadd.f32 %v318_v44, %v293_v45  ;;  %v383_v47 = vpop.f32.mrb[1].mxu1 }
 0x211   :  { %v296_v48 = vpop.f32.mrb[2].mxu1 }
 0x212   :  { %300 = vst [vmem:[%s540_s5] sm:$0xff] %v294_v46  ;;  %v297_v49 = vadd.f32 %v318_v44, %v296_v48  ;;  %v384_v50 = vpop.f32.mrb[3].mxu1 }
 0x214   :  { %301 = vst [vmem:[%s540_s5 + $0x8] sm:$0xff] %v297_v49 }
 0x215   :  { %306 = vsyncpa [#allocation3], 1 }
 0x216   :  { %307 = vsyncpa [#allocation5], 1 }

</bundles_post_ra>
